<compile_context>
chip_gen: v7x
topology: tpu7x:2x2x1
jax: 0.10.0
libtpu: 0.0.40
codegen_flags: <defaults>
</compile_context>

<pallas_src>
import functools

import jax
import jax.numpy as jnp
from jax.experimental import pallas as pl
from jax.experimental.pallas import tpu as pltpu

_LANE = 128


@functools.lru_cache(maxsize=None)
def _vmem_limit_bytes():
    """Per-generation scoped-VMEM limit: ~75% of physical, capped at 96 MiB."""
    try:
        cap = int(pltpu.get_tpu_info().vmem_capacity_bytes)
    except Exception:
        cap = 64 * 1024 * 1024  # conservative fallback (safe on v7x)
    return min((cap * 3) // 4, 96 * 1024 * 1024)


def _choose_spatial_tile(C, HW, itemsize, max_block_bytes):
    """Largest multiple-of-128 spatial tile under budget that ~evenly splits HW.

    Computes n_tiles first, then T = round_up(cdiv(hw128, n_tiles), 128), so the
    last tile wastes at most <128 lanes (instead of up to ~T lanes of padding).
    """
    lane_chunks = pl.cdiv(HW, _LANE)          # number of 128-lane columns
    chunk_bytes = C * _LANE * itemsize
    max_chunks = max(1, max_block_bytes // chunk_bytes)
    n_tiles = pl.cdiv(lane_chunks, max_chunks)
    return pl.cdiv(lane_chunks, n_tiles) * _LANE


# --------------------------------------------------------------------------
# Kernels
# --------------------------------------------------------------------------
def _fused_kernel(x_ref, w1_ref, b1_ref, w2_ref, b2_ref, o_ref, *, inv_hw):
    """Whole image resident in VMEM: pool + SE MLP + rescale, one HBM pass."""
    xb = x_ref[0]                                                   # (C, HW)
    sums = jnp.sum(xb.astype(jnp.float32), axis=1, keepdims=True)   # (C, 1)
    means = sums * inv_hw
    y1 = jnp.dot(w1_ref[...], means,
                 preferred_element_type=jnp.float32) + b1_ref[...]  # (Cr, 1)
    y1 = jnp.maximum(y1, 0.0)
    y2 = jnp.dot(w2_ref[...], y1,
                 preferred_element_type=jnp.float32) + b2_ref[...]  # (C, 1)
    scale = jax.nn.sigmoid(y2)                                      # (C, 1)
    o_ref[0] = (xb * scale).astype(o_ref.dtype)


def _pool_scale_kernel(x_ref, w1_ref, b1_ref, w2_ref, b2_ref, scale_ref, sum_sc,
                       *, hw, tile, inv_hw, mask_tail):
    """HW-tiled spatial-sum reduction; SE MLP fused into the last-tile epilogue."""
    j = pl.program_id(1)

    @pl.when(j == 0)
    def _():
        sum_sc[...] = jnp.zeros_like(sum_sc)

    xb = x_ref[0].astype(jnp.float32)                               # (C, T)
    if mask_tail:
        # Ragged last tile: lanes past HW hold undefined data -> zero them.
        lane = jax.lax.broadcasted_iota(jnp.int32, xb.shape, 1)
        xb = jnp.where(lane < hw - j * tile, xb, 0.0)
    sum_sc[...] += jnp.sum(xb, axis=1, keepdims=True)               # (C, 1)

    @pl.when(j == pl.num_programs(1) - 1)
    def _():
        means = sum_sc[...] * inv_hw                                # (C, 1)
        y1 = jnp.dot(w1_ref[...], means,
                     preferred_element_type=jnp.float32) + b1_ref[...]
        y1 = jnp.maximum(y1, 0.0)
        y2 = jnp.dot(w2_ref[...], y1,
                     preferred_element_type=jnp.float32) + b2_ref[...]
        scale_ref[0] = jax.nn.sigmoid(y2)                           # (C, 1)


def _rescale_kernel(x_ref, scale_ref, o_ref):
    """out = x * per-channel scale, broadcast over the lane-dense spatial tile."""
    o_ref[0] = (x_ref[0] * scale_ref[0]).astype(o_ref.dtype)


# --------------------------------------------------------------------------
# Wrapper
# --------------------------------------------------------------------------
def ca_layer(x, w1, b1, w2, b2, *, force_two_pass=False, max_block_bytes=None):
    """CALayer forward.

    x: (N, C, H, W); w1: (C//8, C); b1: (C//8,); w2: (C, C//8); b2: (C,)
    """
    N, C, H, W = x.shape
    Cr = w1.shape[0]
    HW = H * W
    itemsize = jnp.dtype(x.dtype).itemsize
    inv_hw = 1.0 / HW

    vmem_limit = _vmem_limit_bytes()
    if max_block_bytes is None:
        # Pass 2 pipelines ~2 input + 2 output buffers of this size.
        max_block_bytes = min(16 * 1024 * 1024, vmem_limit // 6)
    fused_budget = vmem_limit // 8   # ~6 MiB on v7x, ~12 MiB on v5e/v6e

    x_flat = x.reshape(N, C, HW)
    b1c = b1.reshape(Cr, 1)
    b2c = b2.reshape(C, 1)

    # ---- fast path: whole image resident in VMEM, single HBM read+write ---
    if (not force_two_pass) and C * HW * itemsize <= fused_budget:
        out_flat = pl.pallas_call(
            functools.partial(_fused_kernel, inv_hw=inv_hw),
            out_shape=jax.ShapeDtypeStruct((N, C, HW), x.dtype),
            grid_spec=pltpu.PrefetchScalarGridSpec(
                num_scalar_prefetch=0,
                grid=(N,),
                in_specs=[
                    pl.BlockSpec((1, C, HW), lambda n: (n, 0, 0)),
                    pl.BlockSpec((Cr, C), lambda n: (0, 0)),
                    pl.BlockSpec((Cr, 1), lambda n: (0, 0)),
                    pl.BlockSpec((C, Cr), lambda n: (0, 0)),
                    pl.BlockSpec((C, 1), lambda n: (0, 0)),
                ],
                out_specs=pl.BlockSpec((1, C, HW), lambda n: (n, 0, 0)),
            ),
            compiler_params=pltpu.CompilerParams(
                dimension_semantics=("parallel",),
                vmem_limit_bytes=vmem_limit),
        )(x_flat, w1, b1c, w2, b2c)
        return out_flat.reshape(N, C, H, W)

    # ---- two-pass path ----------------------------------------------------
    T = _choose_spatial_tile(C, HW, itemsize, max_block_bytes)
    n_tiles = pl.cdiv(HW, T)
    mask_tail = (HW % T) != 0

    # pass 1: HW-tiled reduction, SE-MLP fused into the last-tile epilogue.
    # TODO(synk): on v7x with N==1, add a core-split grid axis over HW tiles so
    # both TensorCores share the reduction (partial sums added in the epilogue).
    scale = pl.pallas_call(
        functools.partial(_pool_scale_kernel, hw=HW, tile=T,
                          inv_hw=inv_hw, mask_tail=mask_tail),
        out_shape=jax.ShapeDtypeStruct((N, C, 1), jnp.float32),
        grid_spec=pltpu.PrefetchScalarGridSpec(
            num_scalar_prefetch=0,
            grid=(N, n_tiles),
            in_specs=[
                pl.BlockSpec((1, C, T), lambda n, j: (n, 0, j)),
                pl.BlockSpec((Cr, C), lambda n, j: (0, 0)),
                pl.BlockSpec((Cr, 1), lambda n, j: (0, 0)),
                pl.BlockSpec((C, Cr), lambda n, j: (0, 0)),
                pl.BlockSpec((C, 1), lambda n, j: (0, 0)),
            ],
            out_specs=pl.BlockSpec((1, C, 1), lambda n, j: (n, 0, 0)),
            scratch_shapes=[pltpu.VMEM((C, 1), jnp.float32)],
        ),
        compiler_params=pltpu.CompilerParams(
            dimension_semantics=("parallel", "arbitrary"),
            vmem_limit_bytes=vmem_limit),
    )(x_flat, w1, b1c, w2, b2c)

    # pass 2: lane-dense channel-wise rescale (ragged tail writes are dropped
    # by Pallas, so no padding/slicing is needed).
    out_flat = pl.pallas_call(
        _rescale_kernel,
        out_shape=jax.ShapeDtypeStruct((N, C, HW), x.dtype),
        grid_spec=pltpu.PrefetchScalarGridSpec(
            num_scalar_prefetch=0,
            grid=(N, n_tiles),
            in_specs=[
                pl.BlockSpec((1, C, T), lambda n, j: (n, 0, j)),
                pl.BlockSpec((1, C, 1), lambda n, j: (n, 0, 0)),
            ],
            out_specs=pl.BlockSpec((1, C, T), lambda n, j: (n, 0, j)),
        ),
        compiler_params=pltpu.CompilerParams(
            dimension_semantics=("parallel", "parallel"),
            vmem_limit_bytes=vmem_limit),
    )(x_flat, scale)

    return out_flat.reshape(N, C, H, W)


# --------------------------------------------------------------------------
# Reference + smoke test
# --------------------------------------------------------------------------
def ca_layer_ref(x, w1, b1, w2, b2):
    """Pure-JAX reference matching the PyTorch forward."""
    y = jnp.mean(x, axis=(2, 3), keepdims=True)            # (N, C, 1, 1)
    y = jnp.einsum('rc,nchw->nrhw', w1, y) + b1[None, :, None, None]
    y = jnp.maximum(y, 0.0)
    y = jnp.einsum('cr,nrhw->nchw', w2, y) + b2[None, :, None, None]
    y = jax.nn.sigmoid(y)
    return x * y


if __name__ == "__main__":
    def _run_case(N, C, H, W, seed, **kwargs):
        Cr = C // 8
        key = jax.random.PRNGKey(seed)
        kx, kw1, kb1, kw2, kb2 = jax.random.split(key, 5)
        x = jax.random.normal(kx, (N, C, H, W), dtype=jnp.float32)
        # Conv2d(C, C//8, 1) weight (C//8, C, 1, 1) -> (C//8, C); bias (C//8,)
        w1 = jax.random.normal(kw1, (Cr, C), dtype=jnp.float32) * 0.1
        b1 = jax.random.normal(kb1, (Cr,), dtype=jnp.float32) * 0.1
        # Conv2d(C//8, C, 1) weight (C, C//8, 1, 1) -> (C, C//8); bias (C,)
        w2 = jax.random.normal(kw2, (C, Cr), dtype=jnp.float32) * 0.1
        b2 = jax.random.normal(kb2, (C,), dtype=jnp.float32) * 0.1

        out = jax.block_until_ready(ca_layer(x, w1, b1, w2, b2, **kwargs))
        ref = jax.block_until_ready(ca_layer_ref(x, w1, b1, w2, b2))
        assert out.shape == (N, C, H, W)
        assert jnp.allclose(out, ref, atol=1e-5, rtol=1e-5), "mismatch vs reference"

    # Fused fast path (lane-aligned and non-aligned spatial dims).
    _run_case(2, 16, 16, 16, seed=0)
    _run_case(2, 16, 9, 9, seed=0)
    # Two-pass path with small forced tiles: exact tiling and ragged-tail mask.
    _run_case(2, 16, 16, 16, seed=1, force_two_pass=True, max_block_bytes=8192)
    _run_case(2, 16, 20, 20, seed=1, force_two_pass=True, max_block_bytes=8192)
    print("KERNEL_OK")
</pallas_src>

<mosaic_0001>
module attributes {stable_mosaic.version = 11 : i64} {
  func.func @_fused_kernel(%arg0: i32, %arg1: memref<1x16x256xf32, #tpu.memory_space<vmem>>, %arg2: memref<2x16xf32, #tpu.memory_space<vmem>>, %arg3: memref<2x1xf32, #tpu.memory_space<vmem>>, %arg4: memref<16x2xf32, #tpu.memory_space<vmem>>, %arg5: memref<16x1xf32, #tpu.memory_space<vmem>>, %arg6: memref<1x16x256xf32, #tpu.memory_space<vmem>>) attributes {dimension_semantics = [#tpu.dimension_semantics<parallel>], iteration_bounds = array<i64: 2>, scalar_prefetch = 0 : i64, scratch_operands = 0 : i64, tpu.core_type = #tpu.core_type<tc>, window_params = [{transform_indices = @transform_0, window_bounds = array<i64: 1, 16, 256>}, {pipeline_mode = #tpu.pipeline_mode<synchronous>, transform_indices = @transform_1, window_bounds = array<i64: 2, 16>}, {pipeline_mode = #tpu.pipeline_mode<synchronous>, transform_indices = @transform_2, window_bounds = array<i64: 2, 1>}, {pipeline_mode = #tpu.pipeline_mode<synchronous>, transform_indices = @transform_3, window_bounds = array<i64: 16, 2>}, {pipeline_mode = #tpu.pipeline_mode<synchronous>, transform_indices = @transform_4, window_bounds = array<i64: 16, 1>}, {transform_indices = @transform_5, window_bounds = array<i64: 1, 16, 256>}]} {
    %c0 = arith.constant 0 : index
    %c0_0 = arith.constant 0 : index
    %c0_1 = arith.constant 0 : index
    %0 = vector.load %arg1[%c0, %c0_0, %c0_1] : memref<1x16x256xf32, #tpu.memory_space<vmem>>, vector<1x16x256xf32>
    %1 = vector.shape_cast %0 : vector<1x16x256xf32> to vector<16x256xf32>
    %cst = arith.constant dense<0.000000e+00> : vector<16xf32>
    %2 = vector.multi_reduction <add>, %1, %cst [1] : vector<16x256xf32> to vector<16xf32>
    %3 = vector.shape_cast %2 : vector<16xf32> to vector<16x1xf32>
    %cst_2 = arith.constant 3.906250e-03 : f32
    %4 = vector.broadcast %cst_2 : f32 to vector<16x1xf32>
    %5 = arith.mulf %3, %4 : vector<16x1xf32>
    %c0_3 = arith.constant 0 : index
    %c0_4 = arith.constant 0 : index
    %6 = vector.load %arg2[%c0_3, %c0_4] : memref<2x16xf32, #tpu.memory_space<vmem>>, vector<2x16xf32>
    %cst_5 = arith.constant dense<0.000000e+00> : vector<2x1xf32>
    %7 = tpu.matmul %6, %5, %cst_5 {dimension_numbers = #tpu.dot_dimension_numbers<[1], [0], [0], [1], [0, 0, 1, 1], [], []>} : vector<2x16xf32>, vector<16x1xf32>, vector<2x1xf32> -> vector<2x1xf32>
    %c0_6 = arith.constant 0 : index
    %c0_7 = arith.constant 0 : index
    %8 = vector.load %arg3[%c0_6, %c0_7] : memref<2x1xf32, #tpu.memory_space<vmem>>, vector<2x1xf32>
    %9 = arith.addf %7, %8 : vector<2x1xf32>
    %cst_8 = arith.constant 0.000000e+00 : f32
    %10 = vector.broadcast %cst_8 : f32 to vector<2x1xf32>
    %11 = arith.maximumf %9, %10 : vector<2x1xf32>
    %c0_9 = arith.constant 0 : index
    %c0_10 = arith.constant 0 : index
    %12 = vector.load %arg4[%c0_9, %c0_10] : memref<16x2xf32, #tpu.memory_space<vmem>>, vector<16x2xf32>
    %cst_11 = arith.constant dense<0.000000e+00> : vector<16x1xf32>
    %13 = tpu.matmul %12, %11, %cst_11 {dimension_numbers = #tpu.dot_dimension_numbers<[1], [0], [0], [1], [0, 0, 1, 1], [], []>} : vector<16x2xf32>, vector<2x1xf32>, vector<16x1xf32> -> vector<16x1xf32>
    %c0_12 = arith.constant 0 : index
    %c0_13 = arith.constant 0 : index
    %14 = vector.load %arg5[%c0_12, %c0_13] : memref<16x1xf32, #tpu.memory_space<vmem>>, vector<16x1xf32>
    %15 = arith.addf %13, %14 : vector<16x1xf32>
    %16 = arith.negf %15 : vector<16x1xf32>
    %17 = math.exp %16 : vector<16x1xf32>
    %cst_14 = arith.constant 1.000000e+00 : f32
    %18 = vector.broadcast %cst_14 : f32 to vector<16x1xf32>
    %19 = arith.addf %18, %17 : vector<16x1xf32>
    %20 = arith.divf %18, %19 : vector<16x1xf32>
    %21 = vector.broadcast %20 : vector<16x1xf32> to vector<16x256xf32>
    %22 = arith.mulf %1, %21 : vector<16x256xf32>
    %c0_15 = arith.constant 0 : index
    %c0_16 = arith.constant 0 : index
    %c0_17 = arith.constant 0 : index
    %23 = vector.load %arg6[%c0_15, %c0_16, %c0_17] : memref<1x16x256xf32, #tpu.memory_space<vmem>>, vector<1x16x256xf32>
    %24 = vector.shape_cast %23 : vector<1x16x256xf32> to vector<16x256xf32>
    %25 = vector.shape_cast %22 : vector<16x256xf32> to vector<1x16x256xf32>
    tpu.vector_store %arg6[%c0_15, %c0_16, %c0_17], %25 {strides = array<i32>} : memref<1x16x256xf32, #tpu.memory_space<vmem>>, vector<1x16x256xf32>,
    return
  }
  func.func @transform_0(%arg0: i32) -> (i32, i32, i32) {
    %c0_i32 = arith.constant 0 : i32
    %c0_i32_0 = arith.constant 0 : i32
    %c0_i32_1 = arith.constant 0 : i32
    return %arg0, %c0_i32, %c0_i32_0 : i32, i32, i32
  }
  func.func @transform_1(%arg0: i32) -> (i32, i32) {
    %c0_i32 = arith.constant 0 : i32
    %c0_i32_0 = arith.constant 0 : i32
    %c0_i32_1 = arith.constant 0 : i32
    return %c0_i32, %c0_i32_0 : i32, i32
  }
  func.func @transform_2(%arg0: i32) -> (i32, i32) {
    %c0_i32 = arith.constant 0 : i32
    %c0_i32_0 = arith.constant 0 : i32
    %c0_i32_1 = arith.constant 0 : i32
    return %c0_i32, %c0_i32_0 : i32, i32
  }
  func.func @transform_3(%arg0: i32) -> (i32, i32) {
    %c0_i32 = arith.constant 0 : i32
    %c0_i32_0 = arith.constant 0 : i32
    %c0_i32_1 = arith.constant 0 : i32
    return %c0_i32, %c0_i32_0 : i32, i32
  }
  func.func @transform_4(%arg0: i32) -> (i32, i32) {
    %c0_i32 = arith.constant 0 : i32
    %c0_i32_0 = arith.constant 0 : i32
    %c0_i32_1 = arith.constant 0 : i32
    return %c0_i32, %c0_i32_0 : i32, i32
  }
  func.func @transform_5(%arg0: i32) -> (i32, i32, i32) {
    %c0_i32 = arith.constant 0 : i32
    %c0_i32_0 = arith.constant 0 : i32
    %c0_i32_1 = arith.constant 0 : i32
    return %arg0, %c0_i32, %c0_i32_0 : i32, i32, i32
  }
}

</mosaic_0001>

<bundles_post_ra>
// kernel: tpu_custom_call.1
= control target key start
LH: loop header
LB: loop body
LE: loop exit
PB: predicated region body
PF: predicated region fallthrough
CT: control target
= control target key end

     0   :  { %10 = vsyncpa [#allocation3], 0  ;;  %s976_s0 = inlined_call_operand.hbm [shape: f32[2,16,256], index: 0, kind: input, shape index: {}]   ;;  %s977_s1 = inlined_call_operand.vmem [shape: f32[2,16], index: 1, kind: input, shape index: {}]   ;;  %s978_s2 = inlined_call_operand.vmem [shape: f32[2,1], index: 2, kind: input, shape index: {}]   ;;  %s979_s3 = inlined_call_operand.vmem [shape: f32[16,2], index: 3, kind: input, shape index: {}]   ;;  %s980_s4 = inlined_call_operand.vmem [shape: f32[16,1], index: 4, kind: input, shape index: {}]   ;;  %s981_s5 = inlined_call_operand.hbm [shape: f32[2,16,256], index: 5, kind: output, shape index: {}]  }
   0x1   :  { %12 = vsyncpa [#allocation3 + $0x1], 0 }
   0x2   :  { %13 = vsyncpa [#allocation4], 0 }
   0x3   :  { %15 = vsyncpa [#allocation4 + $0x1], 0  ;;  %s784_s18 = smov 0   ;;  %s786_s19 = smov 0  }
   0x4   :  { %s788_s20 = smov 0   ;;  %s790_s21 = smov 0  }
   0x5 LB: > { %s805_s22 = sadd.s32 4294967295, %s742_s21   ;;  %s539_s23 = sadd.s32 4294967294, %s742_s21   ;;  %s742_s21 = sphi %s790_s21, %s994_s21   ;;  %s738_s20 = sphi %s788_s20, %s993_s20   ;;  %s734_s19 = sphi %s786_s19, %s992_s19   ;;  %s730_s18 = sphi %s784_s18, %s991_s18  }
   0x6   : > { %s809_s24 = sadd.s32 1, %s742_s21   ;;  %s28_s25 = sadd.s32 1, %s738_s20 }
   0x7   : > { %s25_s26 = ssub.s32 %s742_s21, %s809_s24  ;;  %p35_p0 = scmp.ne.s32.totalorder %s738_s20, %s734_s19 }
   0x8   : > { %p26_p1 = scmp.eq.s32.totalorder %s25_s26, 0  ;;  %p36_p2 = scmp.eq.s32.totalorder %s742_s21, 0 }
   0x9   : > { %p41_p3 = scmp.ne.s32.totalorder %s734_s19, %s730_s18  ;;  %p42_p4 = scmp.eq.s32.totalorder %s805_s22, 0 }
   0xa   : > { %s821_s27 = scalar_select %p26_p1, %s738_s20, %s28_s25  }
   0xb   : > { %p823_p5 = por %p36_p2, %p35_p0  ;;  %p827_p6 = por %p42_p4, %p41_p3 }
   0xc   : > { %p149_p7 = scmp.eq.s32.totalorder %s805_s22, 1  ;;  %p155_p8 = scmp.eq.s32.totalorder %s539_s23, 1 }
   0xd   : > { %p594_p10 = scmp.lt.s32.totalorder %s742_s21, 2  ;;  %s187_s7 = sand.u32 1, %s738_s20  }
   0xe   : > { %p834_p11 = por %p149_p7, %p35_p0  ;;  %p838_p12 = por %p155_p8, %p41_p3 }
   0xf   : > { %s559_s8 = sshll.u32 %s742_s21, 9  ;;  %s542_s9 = sshll.u32 %s187_s7, 5 }
  0x10   : > { %s985_s30 = scalar_select %p834_p11, 1, 0 }
  0x11   : > { %s986_s6 = scalar_select %p838_p12, 1, 0 }
  0x12   : > { %s847_s12 = scalar_lea.hbm %s976_s0, %s559_s8  ;;  %s191_s13 = scalar_lea.vmem [#allocation2], %s542_s9 }
  0x13   : > { %s198_s14 = sshll.u32 %s191_s13, 4  ;;  %p851_p13 = pnand %p594_p10, %p823_p5  ;;  %s855_s14 = int_to_ptr.vmem [resolvable:$true] %s198_s14 }
  0x14   : > { %s857_s16 = scalar_lea.sflag [#allocation3], %s187_s7  ;;  %s646_s17 = scalar_lea.hbm %s847_s12, 512 }
  0x15   : > { %p647_p0 = scmp.ne.s32.totalorder %s847_s12, %s646_s17  ;;  %p648_p1 = pneg %p851_p13 }
  0x16   : > { %s651_s26 = scalar_lea.hbm %s976_s0, 1024  ;;  %p652_p4 = scmp.lt.u32.totalorder %s847_s12, %s976_s0 }
  0x17   : > { %p649_p2 = pnand %p648_p1, %p647_p0  ;;  %p653_p5 = scmp.lt.u32.totalorder %s651_s26, %s646_s17 }
  0x18   : > { %p655_p8 = scmp.lt.u32.totalorder %s646_s17, %s847_s12 }
  0x19   : > { %p650_p3 = pneg %p649_p2  ;;  %p654_p7 = por %p653_p5, %p652_p4 }
  0x1b   : > { %p656_p10 = por %p655_p8, %p654_p7 }
  0x1d   : > { %p657_p9 = pnand %p656_p10, %p650_p3 }
  0x1f   : > { %660 = shalt.err (!%p657_p9)
}
  0x20   : > { %s661_s7 = scalar_lea.vmem %s855_s14, 512  ;;  %s744_s9 = smov [#allocation2]  }
  0x21   : > { %p662_p0 = scmp.ne.s32.totalorder %s855_s14, %s661_s7  ;;  %s666_s10 = sshll.u32 %s744_s9, 4  ;;  %s667_s10 = int_to_ptr.vmem [resolvable:$false] %s666_s10 }
  0x22   : > { %s668_s11 = scalar_lea.vmem %s667_s10, 1024  ;;  %p669_p11 = scmp.lt.s32.totalorder %s855_s14, %s667_s10 }
  0x23   : > { %p664_p2 = pnand %p662_p0, %p648_p1  ;;  %p670_p4 = scmp.lt.s32.totalorder %s668_s11, %s661_s7 }
  0x25   : > { %p665_p12 = pneg %p664_p2  ;;  %p671_p5 = por %p670_p4, %p669_p11 }
  0x27   : > { %p672_p7 = pnand %p671_p5, %p665_p12 }
  0x29   : > { %675 = shalt.err (!%p672_p7)
}
  0x2a   : > { %s745_s13 = smov 256   ;;  %s746_s17 = smov 16  }
  0x2b   : > { %589 = dma.hbm_to_vmem [thread:$0]  (!%p851_p13), %s847_s12, 512, %s855_s14, %s857_s16, %s745_s13, %s745_s13, %s746_s17  }
  0x2c   : > { %p545_p9 = scmp.ge.s32.totalorder %s742_s21, 1  ;;  %p206_p1 = scmp.lt.s32.totalorder %s742_s21, 3 }
  0x2e   : > { %p207_p3 = pnand %p545_p9, %p206_p1 }
  0x2f   : > { %s888_s23 = sand.u32 (!%p207_p3), 1, %s734_s19  }
  0x30   : > { %210 = sbr.rel (%p207_p3) target bundleno = 820 (0x334), region = 40  ;;  %s546_s25 = sshll.u32 (!%p207_p3), %s888_s23, 5 }
  0x31   : > { %s213_s26 = scalar_lea.sflag (!%p207_p3), [#allocation3], %s888_s23  ;;  %s216_s28 = scalar_lea.vmem (!%p207_p3), [#allocation2], %s546_s25 }
  0x37   : > { %721 = dma.done.wait (%p827_p6), %s213_s26, 512  }
  0x38   : > { %723 = vsyncadd (%p827_p6), %s213_s26, 4294966784  ;;  %v243_v0 = vld [vmem:[%s216_s28] sm:$0xff]  ;;  %v244_v1 = vld [vmem:[%s216_s28 + $0x8] sm:$0xff]  ;;  %v747_v6 = vmov 0.0|0.0   ;;  %vm748_vm0 = vmmov 0   ;;  %v749_v7 = vmov 0.0  }
  0x39   : > { %v898_v2 = vld [vmem:[%s216_s28 + $0x10] sm:$0xff]  ;;  %v247_v3 = vadd.f32 %v244_v1, %v243_v0  ;;  %v900_v4 = vld [vmem:[%s216_s28 + $0x18] sm:$0xff]  ;;  %579 = vmatprep.subr.bf16.mxu0 %v747_v6  ;;  %571 = vmatprep.mubr.msk.f32.mxu0 %vm748_vm0, %v749_v7  ;;  %v255_v13 = vld [vmem:[%s977_s1] sm:$0x3]  ;;  %vm257_vm1 = vcmask 130048   ;;  %vm336_vm2 = vcmask 15360  }
  0x3a   : > { %v250_v5 = vadd.f32 %v900_v4, %v898_v2  ;;  %v332_v14 = vld [vmem:[%s979_s3] sm:$0xff]  ;;  %vm343_vm3 = vcmask 1041408   ;;  %v333_v20 = vld [vmem:[%s979_s3 + $0x8] sm:$0xff]  ;;  %v750_v21 = vmov 0   ;;  %s242_s26 = scalar_lea.vmem [#allocation5], %s546_s25  ;;  %s560_s29 = sshll.u32 %s805_s22, 9 }
  0x3b   : > { %248 = vadd.xlane.f32.xlu0 %v247_v3  ;;  %576 = vmatprep.mubr.msk.f32.mxu1 %vm336_vm2, %v332_v14  ;;  %v256_v15 = vld [vmem:[%s978_s2] sm:$0x3]  ;;  %v335_v22 = vld [vmem:[%s980_s4 + $0x8] sm:$0xff]  ;;  %s466_s28 = sshll.u32 %s242_s26, 4  ;;  %s930_s15 = scalar_lea.hbm %s981_s5, %s560_s29  ;;  %s925_s28 = int_to_ptr.vmem [resolvable:$true] %s466_s28 }
  0x3c   : > { %636 = vset.pattern.permute.xlu1 %v750_v21  ;;  %637 = vset.pattern.permute.xlu0 %v750_v21  ;;  %v334_v23 = vld [vmem:[%s980_s4] sm:$0xff]  ;;  %s453_s22 = scalar_lea.sflag [#allocation4], %s888_s23  ;;  %s676_s25 = scalar_lea.vmem %s925_s28, 512 }
  0x3d   : > { %p677_p6 = scmp.ne.s32.totalorder %s925_s28, %s676_s25  ;;  %p988_p11 = scmp.ne.s32.totalorder %s985_s30, 0 }
  0x3e   : > { %s751_s16 = smov [#allocation5]  }
  0x3f   : > { %251 = vadd.xlane.f32.xlu0 %v250_v5  ;;  %p678_p12 = pnand %p677_p6, %p988_p11  ;;  %s680_s8 = sshll.u32 %s751_s16, 4  ;;  %s681_s8 = int_to_ptr.vmem [resolvable:$false] %s680_s8 }
  0x40   : > { %s682_s7 = scalar_lea.vmem %s681_s8, 1024  ;;  %p683_p8 = scmp.lt.s32.totalorder %s925_s28, %s681_s8 }
  0x41   : > { %p679_p13 = pneg %p678_p12  ;;  %p684_p10 = scmp.lt.s32.totalorder %s682_s7, %s676_s25 }
  0x43   : > { %p685_p0 = por %p684_p10, %p683_p8 }
  0x45   : > { %p686_p2 = pnand %p685_p0, %p679_p13 }
  0xc8   : > { %v249_v8 = vpop.xlane.xlu0 %248 }
  0xc9   : > { %v253_v10 = vmul.f32 0.00390625, %v249_v8 }
  0xcc   : > { %v252_v9 = vpop.xlane.xlu0 %251 }
  0xcd   : > { %v254_v11 = vmul.f32 0.00390625, %v252_v9 }
  0xcf   : > { %v580_v12 = vpack.c.bf16 %v254_v11, %v253_v10 }
  0xd1   : > { %581 = vmatpush3.bf16.msra.mxu0 %v580_v12 }
  0xd4   : > { %572 = vmatmul.mubr.msk.f32.vlgmr.msra.gmra.mrb[0].mxu0 %vm257_vm1, %v255_v13 }
 0x1a7   : > { %v327_v16 = vpop.f32.mrb[0].mxu0 }
 0x1a8   : > { %v328_v17 = vadd.f32 %v327_v16, %v256_v15  ;;  %v573_v18 = vpop.f32.mrb[1].mxu0 }
 0x1aa   : > { %v331_v19 = vmax.f32 %v328_v17, 0.0 }
 0x1ac   : > { %574 = vmatprep.subr.msk.mxu1 %vm343_vm3, %v331_v19 }
 0x1ad   : > { %575 = vmatpush3.msk.msra.mxu1 %vm343_vm3, %v331_v19 }
 0x1ae   : > { %577 = vmatmul.mubr.msk.f32.vlgmr.msra.gmra.mrb[0].mxu1 %vm336_vm2, %v333_v20 }
 0x281   : > { %v578_v24 = vpop.f32.mrb[0].mxu1 }
 0x282   : > { %v419_v25 = vadd.f32 %v578_v24, %v335_v22  ;;  %v413_v26 = vpop.f32.mrb[1].mxu1 }
 0x283   : > { %v414_v27 = vadd.f32 %v413_v26, %v334_v23 }
 0x284   : > { %v553_v28 = vmul.f32 -1.442695, %v419_v25 }
 0x285   : > { %v552_v29 = vmul.f32 -1.442695, %v414_v27 }
 0x286   : > { %638 = vpow2.f32 %v553_v28 }
 0x287   : > { %640 = vpow2.f32 %v552_v29 }
 0x290   : > { %v639_v30 = vpop.eup %638 }
 0x291   : > { %v641_v31 = vpop.eup %640  ;;  %v429_v33 = vadd.f32 1.0, %v639_v30 }
 0x292   : > { %v428_v32 = vadd.f32 1.0, %v641_v31 }
 0x294   : > { %642 = vrcp.f32 %v428_v32 }
 0x295   : > { %644 = vrcp.f32 %v429_v33 }
 0x29e   : > { %v643_v34 = vpop.eup %642 }
 0x29f   : > { %436 = vperm.xlu1 %636, %v643_v34   ;;  %v645_v35 = vpop.eup %644 }
 0x2a3   : > { %441 = vperm.xlu1 %636, %v645_v35  }
 0x31e   : > { %v437_v36 = vpop.permute.xlu1 %436 }
 0x31f   : > { %v444_v37 = vmul.f32 %v437_v36, %v243_v0  ;;  %v445_v38 = vmul.f32 %v437_v36, %v244_v1 }
 0x321   : > { %448 = vst [vmem:[%s242_s26] sm:$0xff] %v444_v37  ;;  %449 = vst [vmem:[%s242_s26 + $0x8] sm:$0xff] %v445_v38 }
 0x322   : > { %v442_v39 = vpop.permute.xlu1 %441 }
 0x323   : > { %v446_v40 = vmul.f32 %v442_v39, %v898_v2  ;;  %v447_v41 = vmul.f32 %v442_v39, %v900_v4 }
 0x325   : > { %450 = vst [vmem:[%s242_s26 + $0x10] sm:$0xff] %v446_v40  ;;  %451 = vst [vmem:[%s242_s26 + $0x18] sm:$0xff] %v447_v41 }
 0x326   : > { %689 = shalt.err (!%p686_p2)
}
 0x327   : > { %s690_s9 = scalar_lea.hbm %s930_s15, 512  ;;  %s694_s13 = scalar_lea.hbm %s981_s5, 1024 }
 0x328   : > { %p691_p4 = scmp.ne.s32.totalorder %s930_s15, %s690_s9  ;;  %p695_p9 = scmp.lt.u32.totalorder %s930_s15, %s981_s5 }
 0x329   : > { %p696_p1 = scmp.lt.u32.totalorder %s694_s13, %s690_s9  ;;  %p698_p6 = scmp.lt.u32.totalorder %s690_s9, %s930_s15 }
 0x32a   : > { %p692_p5 = pnand %p691_p4, %p988_p11 }
 0x32b   : > { %p697_p3 = por %p696_p1, %p695_p9 }
 0x32c   : > { %p693_p7 = pneg %p692_p5 }
 0x32d   : > { %p699_p12 = por %p698_p6, %p697_p3 }
 0x32f   : > { %p700_p13 = pnand %p699_p12, %p693_p7 }
 0x331   : > { %703 = shalt.err (!%p700_p13)
}
 0x332   : > { %s752_s29 = smov 256   ;;  %s753_s12 = smov 16  }
 0x333   : > { %584 = dma.vmem_to_hbm [thread:$0]  (%p988_p11), %s925_s28, 512, %s930_s15, %s453_s22, %s752_s29, %s752_s29, %s753_s12  }
 0x334 PF: > { %s481_s14 = sand.u32 1, %s730_s18   ;;  %p989_p8 = scmp.ne.s32.totalorder %s986_s6, 0 }
 0x335   : > { %p990_p10 = scmp.ge.s32.totalorder %s742_s21, 2  ;;  %s482_s25 = scalar_lea.sflag [#allocation4], %s481_s14 }
 0x337   : > { %p591_p0 = pnand %p990_p10, %p989_p8 }
 0x339   : > { %725 = dma.done.wait (!%p591_p0), %s482_s25, 512  }
 0x33a   : > { %727 = vsyncadd (!%p591_p0), %s482_s25, 4294966784  ;;  %p18_p2 = scmp.ge.s32.totalorder %s809_s24, 4   ;;  %s991_s18 = smov %s734_s19 }
 0x33b   : > { %s992_s19 = smov %s738_s20  ;;  %s993_s20 = smov %s821_s27 }
 0x33c   : > { %s994_s21 = smov %s809_s24  ;;  %20 = sbr.rel (!%p18_p2) target bundleno = 5 (0x5), region = 85 }
 0x343   :  { %487 = vsyncpa [#allocation3], 1 }
 0x344   :  { %489 = vsyncpa [#allocation3 + $0x1], 1 }
 0x345   :  { %490 = vsyncpa [#allocation4], 1 }
 0x346   :  { %492 = vsyncpa [#allocation4 + $0x1], 1 }

</bundles_post_ra>
